<compile_context>
chip_gen: v7x
topology: tpu7x:2x2x1
jax: 0.10.0
libtpu: 0.0.40
codegen_flags: <defaults>
</compile_context>

<pallas_src>
import jax
import jax.numpy as jnp
from jax.experimental import pallas as pl
from jax.experimental.pallas import tpu as pltpu


def _round_up(x, m):
    return (x + m - 1) // m * m


def _dis_kernel(z_ref, w1t_ref, b1_ref, w2_ref, b2_ref, out_ref):
    # Layer 1 on the MXU: (TB, IN) @ (IN, H) -> (TB, H); bf16 in, f32 accumulate.
    z = z_ref[...].astype(jnp.bfloat16)                      # VPU cast, hidden under DMA
    h = jnp.dot(z, w1t_ref[...], preferred_element_type=jnp.float32)
    h = jnp.maximum(h + b1_ref[...], 0.0)                    # bias + ReLU in f32 (VPU)
    # Layer 2 (output width 1) off the MXU: VPU scale + lane reduction (XLU).
    o = jnp.sum(h * w2_ref[...], axis=1, keepdims=True) + b2_ref[0, 0]   # (TB, 1)
    out_ref[...] = jax.nn.sigmoid(o).astype(out_ref.dtype)


def _pick_batch_tile(batch):
    """Batch tile: multiple of 128, scaled with B, >=2 grid steps when possible."""
    TB_CAP = 4096                     # z tile f32 @4096 = 3.75 MiB; x2 buffers ~7.5 MiB
    b128 = _round_up(batch, 128)
    if b128 <= 128:
        return 128                    # single small tile; launch overhead dominates anyway
    # Aim for at least two grid steps (v7x megacore) while keeping tiles large.
    tb = min(_round_up(pl.cdiv(b128, 2), 128), TB_CAP)
    return max(tb, 128)


def dis_model_forward(z, w1, b1, w2, b2):
    """Forward pass of DisModel.

    Args (torch nn.Linear layouts):
      z:  [B, 2*latent_dim] float32
      w1: [latent_dim, 2*latent_dim], b1: [latent_dim]
      w2: [1, latent_dim],            b2: [1]
    Returns: [B, 1] float32
    """
    B, in_dim = z.shape
    hid = w1.shape[0]
    hid_pad = _round_up(hid, 128)     # 120 -> 128

    TB = _pick_batch_tile(B)
    grid = (pl.cdiv(B, TB),)          # non-divisible grid: last tile is partial/masked

    # --- one-time layout prep on the tiny weight tensors (exact zero padding) ---
    w1t = jnp.pad(w1.astype(jnp.bfloat16).T,
                  ((0, 0), (0, hid_pad - hid)))                    # [in_dim, 128] bf16
    b1r = jnp.pad(b1.astype(jnp.float32),
                  (0, hid_pad - hid)).reshape(1, hid_pad)          # [1, 128] f32
    w2r = jnp.pad(w2.reshape(-1).astype(jnp.float32),
                  (0, hid_pad - hid)).reshape(1, hid_pad)          # [1, 128] f32
    b2s = b2.reshape(1, 1).astype(jnp.float32)                     # [1, 1]  (SMEM)

    cost = pl.CostEstimate(
        flops=2 * B * in_dim * hid_pad + 2 * B * hid_pad,
        transcendentals=B,
        bytes_accessed=(z.size * 4 + w1t.size * 2 + b1r.size * 4
                        + w2r.size * 4 + 4 + B * 4),
    )

    out = pl.pallas_call(
        _dis_kernel,
        out_shape=jax.ShapeDtypeStruct((B, 1), jnp.float32),
        grid=grid,
        in_specs=[
            pl.BlockSpec((TB, in_dim), lambda i: (i, 0)),          # z: batch-tiled, natural layout
            pl.BlockSpec((in_dim, hid_pad), lambda i: (0, 0)),     # W1^T: resident
            pl.BlockSpec((1, hid_pad), lambda i: (0, 0)),          # b1:   resident
            pl.BlockSpec((1, hid_pad), lambda i: (0, 0)),          # w2:   resident
            pl.BlockSpec(memory_space=pltpu.MemorySpace.SMEM),     # b2 scalar
        ],
        out_specs=pl.BlockSpec((TB, 1), lambda i: (i, 0)),
        compiler_params=pltpu.CompilerParams(
            dimension_semantics=("parallel",),
            vmem_limit_bytes=32 * 1024 * 1024,                     # explicit v7x-safe budget
        ),
        cost_estimate=cost,
    )(z.astype(jnp.float32), w1t, b1r, w2r, b2s)

    return out


if __name__ == "__main__":
    latent_dim = 120

    key = jax.random.PRNGKey(0)
    k_z, k1, k2, k3, k4, k_z2 = jax.random.split(key, 6)

    # Parameters in torch nn.Linear layout, default-init style U(-1/sqrt(fan_in), +).
    lim1 = 1.0 / jnp.sqrt(2.0 * latent_dim)
    lim2 = 1.0 / jnp.sqrt(1.0 * latent_dim)
    w1 = jax.random.uniform(k1, (latent_dim, 2 * latent_dim), jnp.float32, -lim1, lim1)
    b1 = jax.random.uniform(k2, (latent_dim,), jnp.float32, -lim1, lim1)
    w2 = jax.random.uniform(k3, (1, latent_dim), jnp.float32, -lim2, lim2)
    b2 = jax.random.uniform(k4, (1,), jnp.float32, -lim2, lim2)

    def ref_fwd(zz):
        h = jnp.maximum(zz @ w1.T + b1, 0.0)
        return jax.nn.sigmoid(h @ w2.T + b2)

    # Small batch (single partial tile) and a multi-tile batch with a ragged tail.
    for batch, kz in ((8, k_z), (300, k_z2)):
        z = jax.random.normal(kz, (batch, 2 * latent_dim), jnp.float32)
        out = jax.block_until_ready(dis_model_forward(z, w1, b1, w2, b2))
        ref = ref_fwd(z)
        assert out.shape == (batch, 1)
        err = float(jnp.max(jnp.abs(out - ref)))
        # bf16 matmul operands vs f32 reference -> loose tolerance.
        assert jnp.allclose(out, ref, atol=2e-2, rtol=0.0), err

    print("KERNEL_OK")
</pallas_src>

<mosaic_0001>
module attributes {stable_mosaic.version = 11 : i64} {
  func.func @_dis_kernel(%arg0: i32, %arg1: memref<128x240xf32, #tpu.memory_space<vmem>>, %arg2: memref<240x128xbf16, #tpu.memory_space<vmem>>, %arg3: memref<1x128xf32, #tpu.memory_space<vmem>>, %arg4: memref<1x128xf32, #tpu.memory_space<vmem>>, %arg5: memref<1x1xf32, #tpu.memory_space<smem>>, %arg6: memref<128x1xf32, #tpu.memory_space<vmem>>) attributes {dimension_semantics = [#tpu.dimension_semantics<parallel>], iteration_bounds = array<i64: 1>, scalar_prefetch = 0 : i64, scratch_operands = 0 : i64, tpu.core_type = #tpu.core_type<tc>, window_params = [{transform_indices = @transform_0, window_bounds = array<i64: 128, 240>}, {pipeline_mode = #tpu.pipeline_mode<synchronous>, transform_indices = @transform_1, window_bounds = array<i64: 240, 128>}, {pipeline_mode = #tpu.pipeline_mode<synchronous>, transform_indices = @transform_2, window_bounds = array<i64: 1, 128>}, {pipeline_mode = #tpu.pipeline_mode<synchronous>, transform_indices = @transform_3, window_bounds = array<i64: 1, 128>}, {transform_indices = @transform_4, window_bounds = array<i64: 1, 1>}, {transform_indices = @transform_5, window_bounds = array<i64: 128, 1>}]} {
    %c0 = arith.constant 0 : index
    %c0_0 = arith.constant 0 : index
    %0 = vector.load %arg1[%c0, %c0_0] : memref<128x240xf32, #tpu.memory_space<vmem>>, vector<128x240xf32>
    %1 = arith.truncf %0 : vector<128x240xf32> to vector<128x240xbf16>
    %c0_1 = arith.constant 0 : index
    %c0_2 = arith.constant 0 : index
    %2 = vector.load %arg2[%c0_1, %c0_2] : memref<240x128xbf16, #tpu.memory_space<vmem>>, vector<240x128xbf16>
    %cst = arith.constant dense<0.000000e+00> : vector<128x128xf32>
    %3 = tpu.matmul %1, %2, %cst {dimension_numbers = #tpu.dot_dimension_numbers<[1], [0], [0], [1], [0, 0, 1, 1], [], []>} : vector<128x240xbf16>, vector<240x128xbf16>, vector<128x128xf32> -> vector<128x128xf32>
    %c0_3 = arith.constant 0 : index
    %c0_4 = arith.constant 0 : index
    %4 = vector.load %arg3[%c0_3, %c0_4] : memref<1x128xf32, #tpu.memory_space<vmem>>, vector<1x128xf32>
    %5 = vector.broadcast %4 : vector<1x128xf32> to vector<128x128xf32>
    %6 = arith.addf %3, %5 : vector<128x128xf32>
    %cst_5 = arith.constant 0.000000e+00 : f32
    %7 = vector.broadcast %cst_5 : f32 to vector<128x128xf32>
    %8 = arith.maximumf %6, %7 : vector<128x128xf32>
    %c0_6 = arith.constant 0 : index
    %c0_7 = arith.constant 0 : index
    %9 = vector.load %arg4[%c0_6, %c0_7] : memref<1x128xf32, #tpu.memory_space<vmem>>, vector<1x128xf32>
    %10 = vector.broadcast %9 : vector<1x128xf32> to vector<128x128xf32>
    %11 = arith.mulf %8, %10 : vector<128x128xf32>
    %cst_8 = arith.constant dense<0.000000e+00> : vector<128xf32>
    %12 = vector.multi_reduction <add>, %11, %cst_8 [1] : vector<128x128xf32> to vector<128xf32>
    %13 = vector.shape_cast %12 : vector<128xf32> to vector<128x1xf32>
    %c0_9 = arith.constant 0 : index
    %c0_10 = arith.constant 0 : index
    %14 = memref.load %arg5[%c0_9, %c0_10] : memref<1x1xf32, #tpu.memory_space<smem>>
    %15 = vector.broadcast %14 : f32 to vector<128x1xf32>
    %16 = arith.addf %13, %15 : vector<128x1xf32>
    %17 = arith.negf %16 : vector<128x1xf32>
    %18 = math.exp %17 : vector<128x1xf32>
    %cst_11 = arith.constant 1.000000e+00 : f32
    %19 = vector.broadcast %cst_11 : f32 to vector<128x1xf32>
    %20 = arith.addf %19, %18 : vector<128x1xf32>
    %21 = arith.divf %19, %20 : vector<128x1xf32>
    %c0_12 = arith.constant 0 : index
    %c0_13 = arith.constant 0 : index
    %22 = vector.load %arg6[%c0_12, %c0_13] : memref<128x1xf32, #tpu.memory_space<vmem>>, vector<128x1xf32>
    tpu.vector_store %arg6[%c0_12, %c0_13], %21 {strides = array<i32>} : memref<128x1xf32, #tpu.memory_space<vmem>>, vector<128x1xf32>,
    return
  }
  func.func @transform_0(%arg0: i32) -> (i32, i32) {
    %c0_i32 = arith.constant 0 : i32
    %c0_i32_0 = arith.constant 0 : i32
    return %arg0, %c0_i32 : i32, i32
  }
  func.func @transform_1(%arg0: i32) -> (i32, i32) {
    %c0_i32 = arith.constant 0 : i32
    %c0_i32_0 = arith.constant 0 : i32
    %c0_i32_1 = arith.constant 0 : i32
    return %c0_i32, %c0_i32_0 : i32, i32
  }
  func.func @transform_2(%arg0: i32) -> (i32, i32) {
    %c0_i32 = arith.constant 0 : i32
    %c0_i32_0 = arith.constant 0 : i32
    %c0_i32_1 = arith.constant 0 : i32
    return %c0_i32, %c0_i32_0 : i32, i32
  }
  func.func @transform_3(%arg0: i32) -> (i32, i32) {
    %c0_i32 = arith.constant 0 : i32
    %c0_i32_0 = arith.constant 0 : i32
    %c0_i32_1 = arith.constant 0 : i32
    return %c0_i32, %c0_i32_0 : i32, i32
  }
  func.func @transform_4(%arg0: i32) -> (i32, i32) {
    %c0_i32 = arith.constant 0 : i32
    %c0_i32_0 = arith.constant 0 : i32
    %c0_i32_1 = arith.constant 0 : i32
    return %c0_i32, %c0_i32_0 : i32, i32
  }
  func.func @transform_5(%arg0: i32) -> (i32, i32) {
    %c0_i32 = arith.constant 0 : i32
    %c0_i32_0 = arith.constant 0 : i32
    return %arg0, %c0_i32 : i32, i32
  }
}

</mosaic_0001>

<bundles_post_ra>
// kernel: tpu_custom_call.1
= control target key start
LH: loop header
LB: loop body
LE: loop exit
PB: predicated region body
PF: predicated region fallthrough
CT: control target
= control target key end

     0   :  { %11 = vsyncpa [#allocation4], 0  ;;  %s961_s0 = inlined_call_operand.hbm [shape: f32[8,240], index: 0, kind: input, shape index: {}]   ;;  %s962_s1 = inlined_call_operand.hbm [shape: bf16[240,128], index: 1, kind: input, shape index: {}]   ;;  %s963_s2 = inlined_call_operand.vmem [shape: f32[1,128], index: 2, kind: input, shape index: {}]   ;;  %s964_s3 = inlined_call_operand.vmem [shape: f32[1,128], index: 3, kind: input, shape index: {}]   ;;  %s965_s4 = inlined_call_operand.<no memory space> [shape: f32[1,1], index: 4, kind: input, shape index: {}]   ;;  %s966_s5 = inlined_call_operand.vmem [shape: f32[8,1], index: 5, kind: output, shape index: {}]  }
   0x1   :  { %12 = vsyncpa [#allocation6], 0 }
   0x2   :  { %17 = vsyncadd [#allocation4], 3840  ;;  %s796_s18 = smov [#allocation3]   ;;  %s748_s22 = scalar_lea.hbm %s961_s0, 256 }
   0x3   :  { %s18_s19 = sshll.u32 %s796_s18, 4  ;;  %p749_p0 = scmp.ne.s32.totalorder %s961_s0, %s748_s22  ;;  %s19_s19 = int_to_ptr.vmem [resolvable:$true] %s18_s19 }
   0x4   :  { %p752_p1 = scmp.lt.u32.totalorder %s748_s22, %s961_s0 }
   0x6   :  { %p754_p2 = pnand %p752_p1, %p749_p0 }
   0x8   :  { %757 = shalt.err (!%p754_p2)
}
   0x9   :  { %s758_s27 = scalar_lea.vmem %s19_s19, 256  ;;  %s762_s28 = scalar_lea.vmem %s19_s19, 4096 }
   0xa   :  { %p759_p3 = scmp.ne.s32.totalorder %s19_s19, %s758_s27  ;;  %p763_p4 = scmp.lt.s32.totalorder %s19_s19, %s19_s19 }
   0xb   :  { %p764_p5 = scmp.lt.s32.totalorder %s762_s28, %s758_s27 }
   0xd   :  { %p765_p6 = por %p764_p5, %p763_p4 }
   0xf   :  { %p766_p7 = pnand %p765_p6, %p759_p3 }
  0x11   :  { %769 = shalt.err (!%p766_p7)
}
  0x12   :  { %s797_s29 = smov 256   ;;  %s798_s30 = smov 16  }
  0x13   :  { %24 = dma.hbm_to_vmem [thread:$0]  %s961_s0, 256, %s19_s19, [#allocation4], %s797_s29, %s797_s29, %s798_s30  }
  0x14   :  { %s799_s8 = smov [#allocation5]   ;;  %s770_s12 = scalar_lea.hbm %s962_s1, 1920 }
  0x15   :  { %s30_s9 = sshll.u32 %s799_s8, 4  ;;  %p771_p8 = scmp.ne.s32.totalorder %s962_s1, %s770_s12  ;;  %s31_s9 = int_to_ptr.vmem [resolvable:$true] %s30_s9 }
  0x16   :  { %p774_p9 = scmp.lt.u32.totalorder %s770_s12, %s962_s1 }
  0x18   :  { %p776_p10 = pnand %p774_p9, %p771_p8 }
  0x1a   :  { %779 = shalt.err (!%p776_p10)
}
  0x1b   :  { %s780_s17 = scalar_lea.vmem %s31_s9, 1920  ;;  %p785_p12 = scmp.lt.s32.totalorder %s31_s9, %s31_s9 }
  0x1c   :  { %p781_p11 = scmp.ne.s32.totalorder %s31_s9, %s780_s17  ;;  %p786_p13 = scmp.lt.s32.totalorder %s780_s17, %s780_s17 }
  0x1e   :  { %p787_p0 = por %p786_p13, %p785_p12 }
  0x20   :  { %p788_p1 = pnand %p787_p0, %p781_p11 }
  0x22   :  { %791 = shalt.err (!%p788_p1)
}
  0x23   :  { %s800_s0 = smov 64   ;;  %s801_s18 = smov 4  }
  0x24   :  { %36 = dma.hbm_to_vmem [thread:$0]  %s962_s1, 1920, %s31_s9, [#allocation6], %s800_s0, %s800_s0, %s801_s18  }
  0x25   :  { %792 = dma.done.wait [#allocation4], 4096  }
  0x26   :  { %793 = vsyncadd [#allocation4], 4294963200 }
  0x27   :  { %794 = dma.done.wait [#allocation6], 1920  }
  0x28   :  { %795 = vsyncadd [#allocation6], 4294965376  ;;  %v802_v0 = vmov 0   ;;  %v669_v1 = vld [vmem:[#allocation5] sm:$0xff]   ;;  %v670_v2 = vld [vmem:[#allocation5 + $0x8] sm:$0xff]   ;;  %vm225_vm0 = vcmask 916480  }
  0x29   :  { %250 = vmatprep.subr.bf16.mxu0 %v802_v0  ;;  %632 = vmatprep.subr.bf16.mxu1 %v802_v0  ;;  %v671_v3 = vld [vmem:[#allocation5 + $0x10] sm:$0xff]   ;;  %v672_v4 = vld [vmem:[#allocation5 + $0x18] sm:$0xff]   ;;  %v673_v5 = vld [vmem:[#allocation5 + $0x20] sm:$0xff]   ;;  %vm532_vm1 = vcmask 7168  }
  0x2a   :  { %251 = vmatpush1.bf16.msra.mxu0 %v669_v1  ;;  %647 = vmatpush1.bf16.msra.mxu1 %v669_v1  ;;  %v51_v6 = vld [vmem:[#allocation3 + $0x8] sm:$0xff]  ;;  %v53_v7 = vld [vmem:[#allocation3 + $0x18] sm:$0xff]  ;;  %v675_v13 = vld [vmem:[#allocation5 + $0x30] sm:$0xff]  }
  0x2b   :  { %252 = vmatprep.subr.bf16.mxu0 %v802_v0  ;;  %633 = vmatprep.subr.bf16.mxu1 %v802_v0  ;;  %v67_v8 = vld [vmem:[#allocation3 + $0x88] sm:$0xff]  ;;  %v83_v9 = vpack.c.bf16 %v53_v7, %v51_v6  ;;  %v69_v10 = vld [vmem:[#allocation3 + $0x98] sm:$0xff]  ;;  %v677_v15 = vld [vmem:[#allocation5 + $0x40] sm:$0xff]  }
  0x2c   :  { %v91_v11 = vpack.c.bf16 %v69_v10, %v67_v8  ;;  %v674_v12 = vld [vmem:[#allocation5 + $0x28] sm:$0xff]   ;;  %v676_v14 = vld [vmem:[#allocation5 + $0x38] sm:$0xff]   ;;  %v679_v17 = vld [vmem:[#allocation5 + $0x50] sm:$0xff]  }
  0x2d   :  { %607 = vmatprep.mubr.msk.bf16.mxu0 %vm225_vm0, %v83_v9  ;;  %v678_v16 = vld [vmem:[#allocation5 + $0x48] sm:$0xff]   ;;  %v680_v18 = vld [vmem:[#allocation5 + $0x58] sm:$0xff]   ;;  %v681_v19 = vld [vmem:[#allocation5 + $0x60] sm:$0xff]  }
  0x2e   :  { %253 = vmatpush1.bf16.msra.mxu0 %v670_v2  ;;  %648 = vmatpush1.bf16.msra.mxu1 %v670_v2  ;;  %v682_v20 = vld [vmem:[#allocation5 + $0x68] sm:$0xff]   ;;  %v683_v21 = vld [vmem:[#allocation5 + $0x70] sm:$0xff]   ;;  %v50_v22 = vld [vmem:[#allocation3] sm:$0xff] }
  0x2f   :  { %254 = vmatprep.subr.bf16.mxu0 %v802_v0  ;;  %634 = vmatprep.subr.bf16.mxu1 %v802_v0  ;;  %v52_v23 = vld [vmem:[#allocation3 + $0x10] sm:$0xff]  ;;  %v66_v24 = vld [vmem:[#allocation3 + $0x80] sm:$0xff]  ;;  %v55_v26 = vld [vmem:[#allocation3 + $0x28] sm:$0xff] }
  0x30   :  { %611 = vmatprep.mubr.msk.bf16.mxu1 %vm225_vm0, %v91_v11  ;;  %v68_v25 = vld [vmem:[#allocation3 + $0x90] sm:$0xff]  ;;  %v57_v27 = vld [vmem:[#allocation3 + $0x38] sm:$0xff]  ;;  %v71_v28 = vld [vmem:[#allocation3 + $0xa8] sm:$0xff]  ;;  %v82_v30 = vpack.c.bf16 %v52_v23, %v50_v22 }
  0x31   :  { %v73_v29 = vld [vmem:[#allocation3 + $0xb8] sm:$0xff]  ;;  %v90_v31 = vpack.c.bf16 %v68_v25, %v66_v24  ;;  %v85_v32 = vpack.c.bf16 %v57_v27, %v55_v26  ;;  %v54_v34 = vld [vmem:[#allocation3 + $0x20] sm:$0xff]  ;;  %v56_v35 = vld [vmem:[#allocation3 + $0x30] sm:$0xff] }
  0x32   :  { %255 = vmatpush1.bf16.msra.mxu0 %v671_v3  ;;  %649 = vmatpush1.bf16.msra.mxu1 %v671_v3  ;;  %v93_v33 = vpack.c.bf16 %v73_v29, %v71_v28  ;;  %v70_v36 = vld [vmem:[#allocation3 + $0xa0] sm:$0xff]  ;;  %v72_v37 = vld [vmem:[#allocation3 + $0xb0] sm:$0xff]  ;;  %v59_v38 = vld [vmem:[#allocation3 + $0x48] sm:$0xff]  ;;  %v84_v42 = vpack.c.bf16 %v56_v35, %v54_v34 }
  0x33   :  { %256 = vmatprep.subr.bf16.mxu0 %v802_v0  ;;  %635 = vmatprep.subr.bf16.mxu1 %v802_v0  ;;  %v61_v39 = vld [vmem:[#allocation3 + $0x58] sm:$0xff]  ;;  %v75_v40 = vld [vmem:[#allocation3 + $0xc8] sm:$0xff]  ;;  %v92_v43 = vpack.c.bf16 %v72_v37, %v70_v36  ;;  %v58_v46 = vld [vmem:[#allocation3 + $0x40] sm:$0xff] }
  0x34   :  { %v77_v41 = vld [vmem:[#allocation3 + $0xd8] sm:$0xff]  ;;  %v87_v44 = vpack.c.bf16 %v61_v39, %v59_v38  ;;  %v60_v47 = vld [vmem:[#allocation3 + $0x50] sm:$0xff]  ;;  %v74_v48 = vld [vmem:[#allocation3 + $0xc0] sm:$0xff] }
  0x35   :  { %v95_v45 = vpack.c.bf16 %v77_v41, %v75_v40  ;;  %v76_v49 = vld [vmem:[#allocation3 + $0xd0] sm:$0xff]  ;;  %v63_v50 = vld [vmem:[#allocation3 + $0x68] sm:$0xff]  ;;  %v65_v51 = vld [vmem:[#allocation3 + $0x78] sm:$0xff]  ;;  %v86_v54 = vpack.c.bf16 %v60_v47, %v58_v46 }
  0x36   :  { %257 = vmatpush1.bf16.msra.mxu0 %v672_v4  ;;  %650 = vmatpush1.bf16.msra.mxu1 %v672_v4  ;;  %v79_v52 = vld [vmem:[#allocation3 + $0xe8] sm:$0xff]  ;;  %v81_v53 = vld [vmem:[#allocation3 + $0xf8] sm:$0xff]  ;;  %v94_v55 = vpack.c.bf16 %v76_v49, %v74_v48  ;;  %v89_v56 = vpack.c.bf16 %v65_v51, %v63_v50  ;;  %v62_v58 = vld [vmem:[#allocation3 + $0x60] sm:$0xff] }
  0x37   :  { %258 = vmatprep.subr.bf16.mxu0 %v802_v0  ;;  %636 = vmatprep.subr.bf16.mxu1 %v802_v0  ;;  %v97_v57 = vpack.c.bf16 %v81_v53, %v79_v52  ;;  %v64_v59 = vld [vmem:[#allocation3 + $0x70] sm:$0xff]  ;;  %v78_v60 = vld [vmem:[#allocation3 + $0xe0] sm:$0xff] }
  0x38   :  { %v80_v61 = vld [vmem:[#allocation3 + $0xf0] sm:$0xff]  ;;  %v88_v62 = vpack.c.bf16 %v64_v59, %v62_v58  ;;  %v905_v9 = vld [vmem:[%s964_s3] ss:$0 sm:$0xff] }
  0x39   :  { %v96_v63 = vpack.c.bf16 %v80_v61, %v78_v60 }
  0x3a   :  { %259 = vmatpush1.bf16.msra.mxu0 %v673_v5  ;;  %651 = vmatpush1.bf16.msra.mxu1 %v673_v5 }
  0x3b   :  { %260 = vmatprep.subr.bf16.mxu0 %v802_v0  ;;  %637 = vmatprep.subr.bf16.mxu1 %v802_v0 }
  0x3e   :  { %261 = vmatpush1.bf16.msra.mxu0 %v674_v12  ;;  %652 = vmatpush1.bf16.msra.mxu1 %v674_v12 }
  0x3f   :  { %262 = vmatprep.subr.bf16.mxu0 %v802_v0  ;;  %638 = vmatprep.subr.bf16.mxu1 %v802_v0 }
  0x42   :  { %263 = vmatpush1.bf16.msra.mxu0 %v675_v13  ;;  %653 = vmatpush1.bf16.msra.mxu1 %v675_v13 }
  0x43   :  { %264 = vmatprep.subr.bf16.mxu0 %v802_v0  ;;  %639 = vmatprep.subr.bf16.mxu1 %v802_v0 }
  0x46   :  { %265 = vmatpush1.bf16.msra.mxu0 %v676_v14  ;;  %654 = vmatpush1.bf16.msra.mxu1 %v676_v14 }
  0x47   :  { %266 = vmatprep.subr.bf16.mxu0 %v802_v0  ;;  %640 = vmatprep.subr.bf16.mxu1 %v802_v0 }
  0x4a   :  { %267 = vmatpush1.bf16.msra.mxu0 %v677_v15  ;;  %655 = vmatpush1.bf16.msra.mxu1 %v677_v15 }
  0x4b   :  { %268 = vmatprep.subr.bf16.mxu0 %v802_v0  ;;  %641 = vmatprep.subr.bf16.mxu1 %v802_v0 }
  0x4e   :  { %269 = vmatpush1.bf16.msra.mxu0 %v678_v16  ;;  %656 = vmatpush1.bf16.msra.mxu1 %v678_v16 }
  0x4f   :  { %270 = vmatprep.subr.bf16.mxu0 %v802_v0  ;;  %642 = vmatprep.subr.bf16.mxu1 %v802_v0 }
  0x52   :  { %271 = vmatpush1.bf16.msra.mxu0 %v679_v17  ;;  %657 = vmatpush1.bf16.msra.mxu1 %v679_v17 }
  0x53   :  { %272 = vmatprep.subr.bf16.mxu0 %v802_v0  ;;  %643 = vmatprep.subr.bf16.mxu1 %v802_v0 }
  0x56   :  { %273 = vmatpush1.bf16.msra.mxu0 %v680_v18  ;;  %658 = vmatpush1.bf16.msra.mxu1 %v680_v18 }
  0x57   :  { %274 = vmatprep.subr.bf16.mxu0 %v802_v0  ;;  %644 = vmatprep.subr.bf16.mxu1 %v802_v0 }
  0x5a   :  { %275 = vmatpush1.bf16.msra.mxu0 %v681_v19  ;;  %659 = vmatpush1.bf16.msra.mxu1 %v681_v19 }
  0x5b   :  { %276 = vmatprep.subr.bf16.mxu0 %v802_v0  ;;  %645 = vmatprep.subr.bf16.mxu1 %v802_v0 }
  0x5e   :  { %277 = vmatpush1.bf16.msra.mxu0 %v682_v20  ;;  %660 = vmatpush1.bf16.msra.mxu1 %v682_v20 }
  0x5f   :  { %278 = vmatprep.subr.bf16.mxu0 %v802_v0  ;;  %646 = vmatprep.subr.bf16.mxu1 %v802_v0  ;;  %v898_v0 = vld [vmem:[%s963_s2] ss:$0 sm:$0xff] }
  0x62   :  { %279 = vmatpush1.bf16.msra.mxu0 %v683_v21  ;;  %661 = vmatpush1.bf16.msra.mxu1 %v683_v21 }
  0x65   :  { %283 = vmatmul.mubr.bf16.vlgmr.msra.gmra.mrb[0].mxu0 %v82_v30  ;;  %315 = vmatmul.mubr.bf16.vlgmr.msra.gmra.mrb[0].mxu1 %v90_v31 }
  0x66   :  { %608 = vmatprep.mubr.msk.bf16.mxu0 %vm225_vm0, %v85_v32  ;;  %612 = vmatprep.mubr.msk.bf16.mxu1 %vm225_vm0, %v93_v33 }
  0x6d   :  { %291 = vmatmul.mubr.bf16.gmra.mrb[4].mxu0 %v84_v42  ;;  %323 = vmatmul.mubr.bf16.gmra.mrb[4].mxu1 %v92_v43 }
  0x6e   :  { %609 = vmatprep.mubr.msk.bf16.mxu0 %vm225_vm0, %v87_v44  ;;  %613 = vmatprep.mubr.msk.bf16.mxu1 %vm225_vm0, %v95_v45 }
  0x75   :  { %299 = vmatmul.mubr.bf16.gmra.mrb[8].mxu0 %v86_v54  ;;  %331 = vmatmul.mubr.bf16.gmra.mrb[8].mxu1 %v94_v55 }
  0x76   :  { %610 = vmatprep.mubr.msk.bf16.mxu0 %vm225_vm0, %v89_v56  ;;  %614 = vmatprep.mubr.msk.bf16.mxu1 %vm225_vm0, %v97_v57 }
  0x7d   :  { %307 = vmatmul.mubr.bf16.gmra.mrb[12].mxu0 %v88_v62  ;;  %339 = vmatmul.mubr.bf16.gmra.mrb[12].mxu1 %v96_v63 }
 0x138   :  { %v284_v1 = vpop.f32.mrb[0].mxu0  ;;  %v316_v2 = vpop.f32.mrb[0].mxu1 }
 0x139   :  { %v285_v3 = vadd.f32 %v898_v0, %v284_v1  ;;  %v317_v4 = vadd.f32 %v898_v0, %v316_v2  ;;  %v286_v5 = vpop.f32.mrb[1].mxu0  ;;  %v318_v6 = vpop.f32.mrb[1].mxu1 }
 0x13a   :  { %v287_v7 = vpop.f32.mrb[2].mxu0  ;;  %v319_v8 = vpop.f32.mrb[2].mxu1 }
 0x13b   :  { %v347_v10 = vmax.f32 %v285_v3, 0.0  ;;  %v320_v11 = vadd.f32 %v898_v0, %v319_v8  ;;  %v289_v12 = vpop.f32.mrb[3].mxu0  ;;  %v321_v13 = vpop.f32.mrb[3].mxu1  ;;  %v355_v14 = vmax.f32 %v317_v4, 0.0  ;;  %v288_v15 = vadd.f32 %v898_v0, %v287_v7 }
 0x13d   :  { %v356_v16 = vmax.f32 %v320_v11, 0.0  ;;  %v370_v17 = vmul.f32 %v905_v9, %v347_v10  ;;  %v348_v21 = vmax.f32 %v288_v15, 0.0  ;;  %v378_v25 = vmul.f32 %v905_v9, %v355_v14 }
 0x13f   :  { %386 = vadd.xlane.f32.xlu0 %v370_v17  ;;  %v379_v18 = vmul.f32 %v905_v9, %v356_v16  ;;  %v371_v37 = vmul.f32 %v905_v9, %v348_v21 }
 0x140   :  { %v292_v19 = vpop.f32.mrb[4].mxu0  ;;  %v324_v20 = vpop.f32.mrb[4].mxu1 }
 0x141   :  { %v293_v22 = vadd.f32 %v898_v0, %v292_v19  ;;  %404 = vadd.xlane.f32.xlu1 %v379_v18  ;;  %v294_v23 = vpop.f32.mrb[5].mxu0  ;;  %v325_v24 = vadd.f32 %v898_v0, %v324_v20  ;;  %v326_v26 = vpop.f32.mrb[5].mxu1 }
 0x142   :  { %v295_v27 = vpop.f32.mrb[6].mxu0  ;;  %v327_v28 = vpop.f32.mrb[6].mxu1 }
 0x143   :  { %v349_v29 = vmax.f32 %v293_v22, 0.0  ;;  %v296_v30 = vadd.f32 %v898_v0, %v295_v27  ;;  %v297_v31 = vpop.f32.mrb[7].mxu0  ;;  %v357_v32 = vmax.f32 %v325_v24, 0.0  ;;  %402 = vadd.xlane.f32.xlu0 %v378_v25  ;;  %v329_v33 = vpop.f32.mrb[7].mxu1  ;;  %v328_v35 = vadd.f32 %v898_v0, %v327_v28 }
 0x145   :  { %v350_v34 = vmax.f32 %v296_v30, 0.0  ;;  %v372_v36 = vmul.f32 %v905_v9, %v349_v29  ;;  %v380_v38 = vmul.f32 %v905_v9, %v357_v32  ;;  %v358_v41 = vmax.f32 %v328_v35, 0.0 }
 0x147   :  { %390 = vadd.xlane.f32.xlu1 %v372_v36  ;;  %388 = vadd.xlane.f32.xlu0 %v371_v37  ;;  %v373_v45 = vmul.f32 %v905_v9, %v350_v34  ;;  %v381_v56 = vmul.f32 %v905_v9, %v358_v41 }
 0x148   :  { %v300_v39 = vpop.f32.mrb[8].mxu0  ;;  %v332_v40 = vpop.f32.mrb[8].mxu1 }
 0x149   :  { %v301_v42 = vadd.f32 %v898_v0, %v300_v39  ;;  %v302_v43 = vpop.f32.mrb[9].mxu0  ;;  %v333_v44 = vadd.f32 %v898_v0, %v332_v40  ;;  %v334_v46 = vpop.f32.mrb[9].mxu1 }
 0x14a   :  { %v303_v47 = vpop.f32.mrb[10].mxu0  ;;  %v335_v48 = vpop.f32.mrb[10].mxu1 }
 0x14b   :  { %v351_v49 = vmax.f32 %v301_v42, 0.0  ;;  %v304_v50 = vadd.f32 %v898_v0, %v303_v47  ;;  %v305_v51 = vpop.f32.mrb[11].mxu0  ;;  %v359_v52 = vmax.f32 %v333_v44, 0.0  ;;  %392 = vadd.xlane.f32.xlu1 %v373_v45  ;;  %406 = vadd.xlane.f32.xlu0 %v380_v38  ;;  %v337_v53 = vpop.f32.mrb[11].mxu1  ;;  %v336_v55 = vadd.f32 %v898_v0, %v335_v48 }
 0x14d   :  { %v352_v54 = vmax.f32 %v304_v50, 0.0  ;;  %v374_v57 = vmul.f32 %v905_v9, %v351_v49  ;;  %v382_v58 = vmul.f32 %v905_v9, %v359_v52  ;;  %v360_v61 = vmax.f32 %v336_v55, 0.0 }
 0x14f   :  { %408 = vadd.xlane.f32.xlu1 %v381_v56  ;;  %394 = vadd.xlane.f32.xlu0 %v374_v57  ;;  %v375_v2 = vmul.f32 %v905_v9, %v352_v54  ;;  %v383_v14 = vmul.f32 %v905_v9, %v360_v61 }
 0x150   :  { %v308_v59 = vpop.f32.mrb[12].mxu0  ;;  %v340_v60 = vpop.f32.mrb[12].mxu1 }
 0x151   :  { %v309_v62 = vadd.f32 %v898_v0, %v308_v59  ;;  %v310_v63 = vpop.f32.mrb[13].mxu0  ;;  %v341_v1 = vadd.f32 %v898_v0, %v340_v60  ;;  %v342_v3 = vpop.f32.mrb[13].mxu1 }
 0x152   :  { %v311_v4 = vpop.f32.mrb[14].mxu0  ;;  %v343_v5 = vpop.f32.mrb[14].mxu1 }
 0x153   :  { %v353_v6 = vmax.f32 %v309_v62, 0.0  ;;  %v312_v7 = vadd.f32 %v898_v0, %v311_v4  ;;  %v313_v8 = vpop.f32.mrb[15].mxu0  ;;  %v361_v10 = vmax.f32 %v341_v1, 0.0  ;;  %396 = vadd.xlane.f32.xlu1 %v375_v2  ;;  %410 = vadd.xlane.f32.xlu0 %v382_v58  ;;  %v345_v11 = vpop.f32.mrb[15].mxu1  ;;  %v344_v13 = vadd.f32 %v898_v0, %v343_v5 }
 0x154   :  { %v940_v0 = vstv %s965_s4 }
 0x155   :  { %v354_v12 = vmax.f32 %v312_v7, 0.0  ;;  %v376_v15 = vmul.f32 %v905_v9, %v353_v6  ;;  %v384_v16 = vmul.f32 %v905_v9, %v361_v10  ;;  %v362_v17 = vmax.f32 %v344_v13, 0.0 }
 0x157   :  { %412 = vadd.xlane.f32.xlu1 %v383_v14  ;;  %398 = vadd.xlane.f32.xlu0 %v376_v15  ;;  %v377_v18 = vmul.f32 %v905_v9, %v354_v12  ;;  %v385_v19 = vmul.f32 %v905_v9, %v362_v17 }
 0x15b   :  { %400 = vadd.xlane.f32.xlu1 %v377_v18  ;;  %414 = vadd.xlane.f32.xlu0 %v384_v16 }
 0x15f   :  { %416 = vadd.xlane.f32.xlu1 %v385_v19 }
 0x1cc   :  { %v387_v20 = vpop.xlane.xlu0 %386 }
 0x1cd   :  { %v420_v21 = vadd.f32 %v940_v0, %v387_v20 }
 0x1ce   :  { %v405_v22 = vpop.xlane.xlu1 %404 }
 0x1cf   :  { %v616_v23 = vmul.f32 -1.442695, %v420_v21  ;;  %v429_v24 = vadd.f32 %v940_v0, %v405_v22 }
 0x1d0   :  { %v403_v25 = vpop.xlane.xlu0 %402 }
 0x1d1   :  { %684 = vpow2.f32 %v616_v23  ;;  %v625_v26 = vmul.f32 -1.442695, %v429_v24  ;;  %v428_v27 = vadd.f32 %v940_v0, %v403_v25 }
 0x1d3   :  { %686 = vpow2.f32 %v625_v26  ;;  %v624_v9 = vmul.f32 -1.442695, %v428_v27 }
 0x1d4   :  { %v391_v28 = vpop.xlane.xlu1 %390  ;;  %v389_v29 = vpop.xlane.xlu0 %388 }
 0x1d5   :  { %688 = vpow2.f32 %v624_v9  ;;  %v422_v30 = vadd.f32 %v940_v0, %v391_v28  ;;  %v421_v31 = vadd.f32 %v940_v0, %v389_v29 }
 0x1d7   :  { %v618_v32 = vmul.f32 -1.442695, %v422_v30  ;;  %v617_v33 = vmul.f32 -1.442695, %v421_v31 }
 0x1d8   :  { %v393_v34 = vpop.xlane.xlu1 %392  ;;  %v407_v35 = vpop.xlane.xlu0 %406 }
 0x1d9   :  { %690 = vpow2.f32 %v618_v32  ;;  %v423_v36 = vadd.f32 %v940_v0, %v393_v34  ;;  %v430_v37 = vadd.f32 %v940_v0, %v407_v35 }
 0x1da   :  { %692 = vpow2.f32 %v617_v33 }
 0x1db   :  { %v685_v38 = vpop.eup %684  ;;  %v619_v39 = vmul.f32 -1.442695, %v423_v36  ;;  %v626_v40 = vmul.f32 -1.442695, %v430_v37 }
 0x1dc   :  { %v484_v41 = vadd.f32 1.0, %v685_v38  ;;  %v409_v42 = vpop.xlane.xlu1 %408  ;;  %v395_v43 = vpop.xlane.xlu0 %394 }
 0x1dd   :  { %v687_v44 = vpop.eup %686  ;;  %694 = vpow2.f32 %v619_v39  ;;  %v431_v45 = vadd.f32 %v940_v0, %v409_v42  ;;  %v424_v46 = vadd.f32 %v940_v0, %v395_v43 }
 0x1de   :  { %696 = vrcp.f32 %v484_v41  ;;  %v493_v47 = vadd.f32 1.0, %v687_v44 }
 0x1df   :  { %v689_v48 = vpop.eup %688  ;;  %698 = vpow2.f32 %v626_v40  ;;  %v627_v49 = vmul.f32 -1.442695, %v431_v45  ;;  %v620_v50 = vmul.f32 -1.442695, %v424_v46 }
 0x1e0   :  { %700 = vrcp.f32 %v493_v47  ;;  %v492_v51 = vadd.f32 1.0, %v689_v48  ;;  %v397_v52 = vpop.xlane.xlu1 %396  ;;  %v411_v53 = vpop.xlane.xlu0 %410 }
 0x1e1   :  { %702 = vpow2.f32 %v627_v49  ;;  %v425_v54 = vadd.f32 %v940_v0, %v397_v52  ;;  %v432_v55 = vadd.f32 %v940_v0, %v411_v53 }
 0x1e2   :  { %704 = vrcp.f32 %v492_v51 }
 0x1e3   :  { %v691_v56 = vpop.eup %690  ;;  %706 = vpow2.f32 %v620_v50  ;;  %v621_v57 = vmul.f32 -1.442695, %v425_v54  ;;  %v628_v60 = vmul.f32 -1.442695, %v432_v55 }
 0x1e4   :  { %v693_v58 = vpop.eup %692  ;;  %v486_v59 = vadd.f32 1.0, %v691_v56  ;;  %v413_v61 = vpop.xlane.xlu1 %412 }
 0x1e5   :  { %v399_v62 = vpop.xlane.xlu0 %398  ;;  %v485_v63 = vadd.f32 1.0, %v693_v58  ;;  %708 = vpow2.f32 %v621_v57  ;;  %v433_v1 = vadd.f32 %v940_v0, %v413_v61 }
 0x1e6   :  { %v426_v2 = vadd.f32 %v940_v0, %v399_v62  ;;  %710 = vrcp.f32 %v486_v59 }
 0x1e7   :  { %v695_v3 = vpop.eup %694  ;;  %712 = vrcp.f32 %v485_v63  ;;  %v629_v4 = vmul.f32 -1.442695, %v433_v1 }
 0x1e8   :  { %v622_v5 = vmul.f32 -1.442695, %v426_v2  ;;  %v697_v6 = vpop.eup %696  ;;  %v487_v7 = vadd.f32 1.0, %v695_v3  ;;  %714 = vpow2.f32 %v628_v60  ;;  %v401_v8 = vpop.xlane.xlu1 %400 }
 0x1e9   :  { %v415_v10 = vpop.xlane.xlu0 %414  ;;  %v699_v11 = vpop.eup %698  ;;  %533 = vst.msk [vmem:[#allocation7] sm:$0xff] %vm532_vm1, %v697_v6  ;;  %716 = vpow2.f32 %v629_v4  ;;  %v427_v12 = vadd.f32 %v940_v0, %v401_v8 }
 0x1ea   :  { %v434_v13 = vadd.f32 %v940_v0, %v415_v10  ;;  %v701_v14 = vpop.eup %700  ;;  %718 = vrcp.f32 %v487_v7  ;;  %v494_v15 = vadd.f32 1.0, %v699_v11 }
 0x1eb   :  { %v703_v16 = vpop.eup %702  ;;  %720 = vpow2.f32 %v622_v5  ;;  %v623_v17 = vmul.f32 -1.442695, %v427_v12 }
 0x1ec   :  { %v630_v18 = vmul.f32 -1.442695, %v434_v13  ;;  %v705_v19 = vpop.eup %704  ;;  %722 = vrcp.f32 %v494_v15  ;;  %v495_v20 = vadd.f32 1.0, %v703_v16  ;;  %v417_v21 = vpop.xlane.xlu1 %416 }
 0x1ed   :  { %v707_v22 = vpop.eup %706  ;;  %724 = vpow2.f32 %v623_v17  ;;  %v435_v23 = vadd.f32 %v940_v0, %v417_v21 }
 0x1ee   :  { %726 = vrcp.f32 %v495_v20  ;;  %v488_v24 = vadd.f32 1.0, %v707_v22 }
 0x1ef   :  { %v709_v25 = vpop.eup %708  ;;  %728 = vpow2.f32 %v630_v18  ;;  %v631_v26 = vmul.f32 -1.442695, %v435_v23 }
 0x1f0   :  { %v711_v27 = vpop.eup %710  ;;  %v578_v9 = vld [vmem:[#allocation7] sm:$0xff]  ;;  %730 = vrcp.f32 %v488_v24  ;;  %v489_v28 = vadd.f32 1.0, %v709_v25 }
 0x1f1   :  { %v713_v29 = vpop.eup %712  ;;  %579 = vst [vmem:[%s966_s5] sm:$0xff] %v578_v9  ;;  %732 = vpow2.f32 %v631_v26 }
 0x1f2   :  { %v715_v30 = vpop.eup %714  ;;  %734 = vrcp.f32 %v489_v28 }
 0x1f3   :  { %v717_v31 = vpop.eup %716  ;;  %v496_v32 = vadd.f32 1.0, %v715_v30 }
 0x1f4   :  { %v719_v0 = vpop.eup %718  ;;  %v497_v33 = vadd.f32 1.0, %v717_v31 }
 0x1f5   :  { %v721_v34 = vpop.eup %720  ;;  %736 = vrcp.f32 %v496_v32 }
 0x1f6   :  { %v723_v35 = vpop.eup %722  ;;  %738 = vrcp.f32 %v497_v33  ;;  %v490_v36 = vadd.f32 1.0, %v721_v34 }
 0x1f7   :  { %v725_v37 = vpop.eup %724 }
 0x1f8   :  { %v727_v38 = vpop.eup %726  ;;  %740 = vrcp.f32 %v490_v36  ;;  %v491_v39 = vadd.f32 1.0, %v725_v37 }
 0x1f9   :  { %v729_v40 = vpop.eup %728 }
 0x1fa   :  { %v731_v41 = vpop.eup %730  ;;  %742 = vrcp.f32 %v491_v39  ;;  %v498_v42 = vadd.f32 1.0, %v729_v40 }
 0x1fb   :  { %v733_v43 = vpop.eup %732 }
 0x1fc   :  { %v735_v44 = vpop.eup %734  ;;  %744 = vrcp.f32 %v498_v42  ;;  %v499_v45 = vadd.f32 1.0, %v733_v43 }
 0x1fe   :  { %746 = vrcp.f32 %v499_v45 }
 0x1ff   :  { %v737_v46 = vpop.eup %736 }
 0x200   :  { %v739_v47 = vpop.eup %738 }
 0x202   :  { %v741_v48 = vpop.eup %740 }
 0x204   :  { %v743_v49 = vpop.eup %742 }
 0x206   :  { %v745_v50 = vpop.eup %744 }
 0x208   :  { %v747_v51 = vpop.eup %746 }
 0x209   :  { %585 = vsyncpa [#allocation4], 1 }
 0x20a   :  { %586 = vsyncpa [#allocation6], 1 }

</bundles_post_ra>
